<compile_context>
chip_gen: v7x
topology: tpu7x:2x2x1
jax: 0.10.0
libtpu: 0.0.40
codegen_flags: <defaults>
</compile_context>

<pallas_src>
import functools

import jax
import jax.numpy as jnp
from jax.experimental import pallas as pl
from jax.experimental.pallas import tpu as pltpu


def _conv_bn_relu_kernel(x_ref, w_ref, scale_ref, bias_ref, o_ref, *,
                         ks, wp, q, use_relu):
    """One batch element x one Cout tile.

    x_ref:     (Cin, Np)          flattened zero-padded input plane
    w_ref:     (ks*ks, bco, Cin)  conv taps, tap-major
    scale_ref: (bco, 1)           folded BN scale
    bias_ref:  (bco, 1)           folded BN bias
    o_ref:     (bco, Q)           flattened conv output (junk columns are
                                  trimmed by the wrapper when un-flattening)
    """
    bco = o_ref.shape[0]
    acc = jnp.zeros((bco, q), dtype=jnp.float32)
    for ky in range(ks):                      # static, unrolled
        for kx in range(ks):
            d = ky * wp + kx                  # static lane offset
            x_tap = x_ref[:, d:d + q]         # (Cin, Q)
            w_tap = w_ref[ky * ks + kx]       # (bco, Cin)
            acc = acc + jnp.dot(w_tap, x_tap,
                                preferred_element_type=jnp.float32)
    y = acc * scale_ref[...] + bias_ref[...]  # fused inference BatchNorm
    if use_relu:
        y = jnp.maximum(y, 0.0)
    o_ref[...] = y.astype(o_ref.dtype)


def conv_bn_relu_forward(x, w, gamma, beta, running_mean, running_var,
                         *, eps=1e-5, padding=1, use_relu=True):
    """x: (B, Cin, H, W); w: (Cout, Cin, ks, ks). stride=1, groups=1, bias=False."""
    B, Cin, H, W = x.shape
    Cout, Cin_w, ks, ks2 = w.shape
    assert Cin_w == Cin and ks == ks2
    p = padding
    Hp, Wp = H + 2 * p, W + 2 * p
    Ho, Wo = H + 2 * p - ks + 1, W + 2 * p - ks + 1   # stride 1
    Np = Hp * Wp
    Q = (Ho - 1) * Wp + Wo   # flattened output length (incl. junk columns)

    # ---- wrapper-side layout plumbing (cheap XLA ops) ---------------------
    xp = jnp.pad(x, ((0, 0), (0, 0), (p, p), (p, p)))
    xf = xp.reshape(B, Cin, Np)                          # lane-dense last dim
    wt = jnp.transpose(w, (2, 3, 0, 1)).reshape(ks * ks, Cout, Cin)

    # Fold inference-mode BatchNorm into per-channel scale / bias.
    # TODO(synk): training-mode BatchNorm (batch statistics) would need an
    # extra reduction pass; eval/inference semantics are implemented here.
    scale = (gamma / jnp.sqrt(running_var + eps)).astype(jnp.float32)
    bias = (beta - running_mean * scale).astype(jnp.float32)
    scale = scale.reshape(Cout, 1)
    bias = bias.reshape(Cout, 1)

    # Cout tiling -> second parallel grid axis (v7x has 2 TensorCores).
    if Cout <= 128:
        bco = Cout
    elif Cout % 128 == 0:
        bco = 128
    else:
        bco = Cout
    n_co = Cout // bco

    kernel = functools.partial(_conv_bn_relu_kernel, ks=ks, wp=Wp, q=Q,
                               use_relu=use_relu)
    out_flat = pl.pallas_call(
        kernel,
        out_shape=jax.ShapeDtypeStruct((B, Cout, Q), x.dtype),
        grid=(B, n_co),
        in_specs=[
            pl.BlockSpec((None, Cin, Np), lambda b, j: (b, 0, 0)),
            pl.BlockSpec((ks * ks, bco, Cin), lambda b, j: (0, j, 0)),
            pl.BlockSpec((bco, 1), lambda b, j: (j, 0)),
            pl.BlockSpec((bco, 1), lambda b, j: (j, 0)),
        ],
        out_specs=pl.BlockSpec((None, bco, Q), lambda b, j: (b, j, 0)),
        compiler_params=pltpu.CompilerParams(
            dimension_semantics=("parallel", "parallel")),
    )(xf, wt, scale, bias)

    # ---- un-flatten: pad Q -> Ho*Wp, reshape, drop row-crossing junk ------
    out_flat = jnp.pad(out_flat, ((0, 0), (0, 0), (0, Ho * Wp - Q)))
    out = out_flat.reshape(B, Cout, Ho, Wp)[:, :, :, :Wo]
    return out


def conv_bn_relu_reference(x, w, gamma, beta, running_mean, running_var,
                           *, eps=1e-5, padding=1, use_relu=True):
    """Pure-JAX exact-f32 (no MXU) reference matching the PyTorch forward."""
    B, Cin, H, W = x.shape
    Cout, _, ks, _ = w.shape
    p = padding
    xp = jnp.pad(x, ((0, 0), (0, 0), (p, p), (p, p)))
    Ho, Wo = H + 2 * p - ks + 1, W + 2 * p - ks + 1
    out = jnp.zeros((B, Cout, Ho, Wo), jnp.float32)
    for ky in range(ks):
        for kx in range(ks):
            xs = xp[:, :, ky:ky + Ho, kx:kx + Wo]          # (B, Cin, Ho, Wo)
            w_tap = w[:, :, ky, kx]                        # (Cout, Cin)
            out = out + jnp.sum(
                xs[:, None, :, :, :] * w_tap[None, :, :, None, None], axis=2)
    scale = gamma / jnp.sqrt(running_var + eps)
    bias = beta - running_mean * scale
    out = out * scale[None, :, None, None] + bias[None, :, None, None]
    if use_relu:
        out = jnp.maximum(out, 0.0)
    return out.astype(x.dtype)


if __name__ == "__main__":
    B, Cin, Cout, H, W = 2, 4, 8, 16, 16
    ks, padding = 3, 1

    key = jax.random.PRNGKey(0)
    kx_, kw_, kg, kb, km, kv = jax.random.split(key, 6)
    x = jax.random.normal(kx_, (B, Cin, H, W), dtype=jnp.float32)
    bound = 1.0 / (Cin * ks * ks) ** 0.5      # PyTorch Conv2d default init
    w = jax.random.uniform(kw_, (Cout, Cin, ks, ks), jnp.float32,
                           minval=-bound, maxval=bound)
    # Round conv operands to bf16-representable f32 so the correctness check
    # is independent of the MXU's f32 pass-count (products are then exact).
    x = x.astype(jnp.bfloat16).astype(jnp.float32)
    w = w.astype(jnp.bfloat16).astype(jnp.float32)

    gamma = jax.random.uniform(kg, (Cout,), jnp.float32, minval=0.5, maxval=1.5)
    beta = jax.random.normal(kb, (Cout,), dtype=jnp.float32) * 0.1
    running_mean = jax.random.normal(km, (Cout,), dtype=jnp.float32) * 0.1
    running_var = jax.random.uniform(kv, (Cout,), jnp.float32,
                                     minval=0.5, maxval=1.5)

    ok = True
    for use_relu in (True, False):
        out = conv_bn_relu_forward(x, w, gamma, beta, running_mean,
                                   running_var, padding=padding,
                                   use_relu=use_relu)
        out = jax.block_until_ready(out)
        ref = conv_bn_relu_reference(x, w, gamma, beta, running_mean,
                                     running_var, padding=padding,
                                     use_relu=use_relu)
        assert out.shape == (B, Cout, H, W)
        ok = ok and bool(jnp.allclose(out, ref, atol=1e-4, rtol=1e-4))
    assert ok
    print("KERNEL_OK")
</pallas_src>

<mosaic_0001>
module attributes {stable_mosaic.version = 11 : i64} {
  func.func @_conv_bn_relu_kernel(%arg0: i32, %arg1: i32, %arg2: memref<1x4x324xf32, #tpu.memory_space<vmem>>, %arg3: memref<9x8x4xf32, #tpu.memory_space<vmem>>, %arg4: memref<8x1xf32, #tpu.memory_space<vmem>>, %arg5: memref<8x1xf32, #tpu.memory_space<vmem>>, %arg6: memref<1x8x286xf32, #tpu.memory_space<vmem>>) attributes {dimension_semantics = [#tpu.dimension_semantics<parallel>, #tpu.dimension_semantics<parallel>], iteration_bounds = array<i64: 2, 1>, scalar_prefetch = 0 : i64, scratch_operands = 0 : i64, tpu.core_type = #tpu.core_type<tc>, window_params = [{transform_indices = @transform_0, window_bounds = array<i64: 1, 4, 324>}, {transform_indices = @transform_1, window_bounds = array<i64: 9, 8, 4>}, {transform_indices = @transform_2, window_bounds = array<i64: 8, 1>}, {transform_indices = @transform_3, window_bounds = array<i64: 8, 1>}, {transform_indices = @transform_4, window_bounds = array<i64: 1, 8, 286>}]} {
    %cst = arith.constant 0.000000e+00 : f32
    %0 = vector.broadcast %cst : f32 to vector<8x286xf32>
    %c0 = arith.constant 0 : index
    %c0_0 = arith.constant 0 : index
    %c0_1 = arith.constant 0 : index
    %1 = vector.load %arg2[%c0, %c0_0, %c0_1] : memref<1x4x324xf32, #tpu.memory_space<vmem>>, vector<1x4x286xf32>
    %2 = vector.shape_cast %1 : vector<1x4x286xf32> to vector<4x286xf32>
    %c0_2 = arith.constant 0 : index
    %c0_3 = arith.constant 0 : index
    %c0_4 = arith.constant 0 : index
    %3 = vector.load %arg3[%c0_2, %c0_3, %c0_4] : memref<9x8x4xf32, #tpu.memory_space<vmem>>, vector<1x8x4xf32>
    %4 = vector.shape_cast %3 : vector<1x8x4xf32> to vector<8x4xf32>
    %cst_5 = arith.constant dense<0.000000e+00> : vector<8x286xf32>
    %5 = tpu.matmul %4, %2, %cst_5 {dimension_numbers = #tpu.dot_dimension_numbers<[1], [0], [0], [1], [0, 0, 1, 1], [], []>} : vector<8x4xf32>, vector<4x286xf32>, vector<8x286xf32> -> vector<8x286xf32>
    %6 = arith.addf %0, %5 : vector<8x286xf32>
    %c0_6 = arith.constant 0 : index
    %c0_7 = arith.constant 0 : index
    %c1 = arith.constant 1 : index
    %7 = vector.load %arg2[%c0_6, %c0_7, %c1] : memref<1x4x324xf32, #tpu.memory_space<vmem>>, vector<1x4x286xf32>
    %8 = vector.shape_cast %7 : vector<1x4x286xf32> to vector<4x286xf32>
    %c1_8 = arith.constant 1 : index
    %c0_9 = arith.constant 0 : index
    %c0_10 = arith.constant 0 : index
    %9 = vector.load %arg3[%c1_8, %c0_9, %c0_10] : memref<9x8x4xf32, #tpu.memory_space<vmem>>, vector<1x8x4xf32>
    %10 = vector.shape_cast %9 : vector<1x8x4xf32> to vector<8x4xf32>
    %cst_11 = arith.constant dense<0.000000e+00> : vector<8x286xf32>
    %11 = tpu.matmul %10, %8, %cst_11 {dimension_numbers = #tpu.dot_dimension_numbers<[1], [0], [0], [1], [0, 0, 1, 1], [], []>} : vector<8x4xf32>, vector<4x286xf32>, vector<8x286xf32> -> vector<8x286xf32>
    %12 = arith.addf %6, %11 : vector<8x286xf32>
    %c0_12 = arith.constant 0 : index
    %c0_13 = arith.constant 0 : index
    %c2 = arith.constant 2 : index
    %13 = vector.load %arg2[%c0_12, %c0_13, %c2] : memref<1x4x324xf32, #tpu.memory_space<vmem>>, vector<1x4x286xf32>
    %14 = vector.shape_cast %13 : vector<1x4x286xf32> to vector<4x286xf32>
    %c2_14 = arith.constant 2 : index
    %c0_15 = arith.constant 0 : index
    %c0_16 = arith.constant 0 : index
    %15 = vector.load %arg3[%c2_14, %c0_15, %c0_16] : memref<9x8x4xf32, #tpu.memory_space<vmem>>, vector<1x8x4xf32>
    %16 = vector.shape_cast %15 : vector<1x8x4xf32> to vector<8x4xf32>
    %cst_17 = arith.constant dense<0.000000e+00> : vector<8x286xf32>
    %17 = tpu.matmul %16, %14, %cst_17 {dimension_numbers = #tpu.dot_dimension_numbers<[1], [0], [0], [1], [0, 0, 1, 1], [], []>} : vector<8x4xf32>, vector<4x286xf32>, vector<8x286xf32> -> vector<8x286xf32>
    %18 = arith.addf %12, %17 : vector<8x286xf32>
    %c0_18 = arith.constant 0 : index
    %c0_19 = arith.constant 0 : index
    %c18 = arith.constant 18 : index
    %19 = vector.load %arg2[%c0_18, %c0_19, %c18] : memref<1x4x324xf32, #tpu.memory_space<vmem>>, vector<1x4x286xf32>
    %20 = vector.shape_cast %19 : vector<1x4x286xf32> to vector<4x286xf32>
    %c3 = arith.constant 3 : index
    %c0_20 = arith.constant 0 : index
    %c0_21 = arith.constant 0 : index
    %21 = vector.load %arg3[%c3, %c0_20, %c0_21] : memref<9x8x4xf32, #tpu.memory_space<vmem>>, vector<1x8x4xf32>
    %22 = vector.shape_cast %21 : vector<1x8x4xf32> to vector<8x4xf32>
    %cst_22 = arith.constant dense<0.000000e+00> : vector<8x286xf32>
    %23 = tpu.matmul %22, %20, %cst_22 {dimension_numbers = #tpu.dot_dimension_numbers<[1], [0], [0], [1], [0, 0, 1, 1], [], []>} : vector<8x4xf32>, vector<4x286xf32>, vector<8x286xf32> -> vector<8x286xf32>
    %24 = arith.addf %18, %23 : vector<8x286xf32>
    %c0_23 = arith.constant 0 : index
    %c0_24 = arith.constant 0 : index
    %c19 = arith.constant 19 : index
    %25 = vector.load %arg2[%c0_23, %c0_24, %c19] : memref<1x4x324xf32, #tpu.memory_space<vmem>>, vector<1x4x286xf32>
    %26 = vector.shape_cast %25 : vector<1x4x286xf32> to vector<4x286xf32>
    %c4 = arith.constant 4 : index
    %c0_25 = arith.constant 0 : index
    %c0_26 = arith.constant 0 : index
    %27 = vector.load %arg3[%c4, %c0_25, %c0_26] : memref<9x8x4xf32, #tpu.memory_space<vmem>>, vector<1x8x4xf32>
    %28 = vector.shape_cast %27 : vector<1x8x4xf32> to vector<8x4xf32>
    %cst_27 = arith.constant dense<0.000000e+00> : vector<8x286xf32>
    %29 = tpu.matmul %28, %26, %cst_27 {dimension_numbers = #tpu.dot_dimension_numbers<[1], [0], [0], [1], [0, 0, 1, 1], [], []>} : vector<8x4xf32>, vector<4x286xf32>, vector<8x286xf32> -> vector<8x286xf32>
    %30 = arith.addf %24, %29 : vector<8x286xf32>
    %c0_28 = arith.constant 0 : index
    %c0_29 = arith.constant 0 : index
    %c20 = arith.constant 20 : index
    %31 = vector.load %arg2[%c0_28, %c0_29, %c20] : memref<1x4x324xf32, #tpu.memory_space<vmem>>, vector<1x4x286xf32>
    %32 = vector.shape_cast %31 : vector<1x4x286xf32> to vector<4x286xf32>
    %c5 = arith.constant 5 : index
    %c0_30 = arith.constant 0 : index
    %c0_31 = arith.constant 0 : index
    %33 = vector.load %arg3[%c5, %c0_30, %c0_31] : memref<9x8x4xf32, #tpu.memory_space<vmem>>, vector<1x8x4xf32>
    %34 = vector.shape_cast %33 : vector<1x8x4xf32> to vector<8x4xf32>
    %cst_32 = arith.constant dense<0.000000e+00> : vector<8x286xf32>
    %35 = tpu.matmul %34, %32, %cst_32 {dimension_numbers = #tpu.dot_dimension_numbers<[1], [0], [0], [1], [0, 0, 1, 1], [], []>} : vector<8x4xf32>, vector<4x286xf32>, vector<8x286xf32> -> vector<8x286xf32>
    %36 = arith.addf %30, %35 : vector<8x286xf32>
    %c0_33 = arith.constant 0 : index
    %c0_34 = arith.constant 0 : index
    %c36 = arith.constant 36 : index
    %37 = vector.load %arg2[%c0_33, %c0_34, %c36] : memref<1x4x324xf32, #tpu.memory_space<vmem>>, vector<1x4x286xf32>
    %38 = vector.shape_cast %37 : vector<1x4x286xf32> to vector<4x286xf32>
    %c6 = arith.constant 6 : index
    %c0_35 = arith.constant 0 : index
    %c0_36 = arith.constant 0 : index
    %39 = vector.load %arg3[%c6, %c0_35, %c0_36] : memref<9x8x4xf32, #tpu.memory_space<vmem>>, vector<1x8x4xf32>
    %40 = vector.shape_cast %39 : vector<1x8x4xf32> to vector<8x4xf32>
    %cst_37 = arith.constant dense<0.000000e+00> : vector<8x286xf32>
    %41 = tpu.matmul %40, %38, %cst_37 {dimension_numbers = #tpu.dot_dimension_numbers<[1], [0], [0], [1], [0, 0, 1, 1], [], []>} : vector<8x4xf32>, vector<4x286xf32>, vector<8x286xf32> -> vector<8x286xf32>
    %42 = arith.addf %36, %41 : vector<8x286xf32>
    %c0_38 = arith.constant 0 : index
    %c0_39 = arith.constant 0 : index
    %c37 = arith.constant 37 : index
    %43 = vector.load %arg2[%c0_38, %c0_39, %c37] : memref<1x4x324xf32, #tpu.memory_space<vmem>>, vector<1x4x286xf32>
    %44 = vector.shape_cast %43 : vector<1x4x286xf32> to vector<4x286xf32>
    %c7 = arith.constant 7 : index
    %c0_40 = arith.constant 0 : index
    %c0_41 = arith.constant 0 : index
    %45 = vector.load %arg3[%c7, %c0_40, %c0_41] : memref<9x8x4xf32, #tpu.memory_space<vmem>>, vector<1x8x4xf32>
    %46 = vector.shape_cast %45 : vector<1x8x4xf32> to vector<8x4xf32>
    %cst_42 = arith.constant dense<0.000000e+00> : vector<8x286xf32>
    %47 = tpu.matmul %46, %44, %cst_42 {dimension_numbers = #tpu.dot_dimension_numbers<[1], [0], [0], [1], [0, 0, 1, 1], [], []>} : vector<8x4xf32>, vector<4x286xf32>, vector<8x286xf32> -> vector<8x286xf32>
    %48 = arith.addf %42, %47 : vector<8x286xf32>
    %c0_43 = arith.constant 0 : index
    %c0_44 = arith.constant 0 : index
    %c38 = arith.constant 38 : index
    %49 = vector.load %arg2[%c0_43, %c0_44, %c38] : memref<1x4x324xf32, #tpu.memory_space<vmem>>, vector<1x4x286xf32>
    %50 = vector.shape_cast %49 : vector<1x4x286xf32> to vector<4x286xf32>
    %c8 = arith.constant 8 : index
    %c0_45 = arith.constant 0 : index
    %c0_46 = arith.constant 0 : index
    %51 = vector.load %arg3[%c8, %c0_45, %c0_46] : memref<9x8x4xf32, #tpu.memory_space<vmem>>, vector<1x8x4xf32>
    %52 = vector.shape_cast %51 : vector<1x8x4xf32> to vector<8x4xf32>
    %cst_47 = arith.constant dense<0.000000e+00> : vector<8x286xf32>
    %53 = tpu.matmul %52, %50, %cst_47 {dimension_numbers = #tpu.dot_dimension_numbers<[1], [0], [0], [1], [0, 0, 1, 1], [], []>} : vector<8x4xf32>, vector<4x286xf32>, vector<8x286xf32> -> vector<8x286xf32>
    %54 = arith.addf %48, %53 : vector<8x286xf32>
    %c0_48 = arith.constant 0 : index
    %c0_49 = arith.constant 0 : index
    %55 = vector.load %arg4[%c0_48, %c0_49] : memref<8x1xf32, #tpu.memory_space<vmem>>, vector<8x1xf32>
    %56 = vector.broadcast %55 : vector<8x1xf32> to vector<8x286xf32>
    %57 = arith.mulf %54, %56 : vector<8x286xf32>
    %c0_50 = arith.constant 0 : index
    %c0_51 = arith.constant 0 : index
    %58 = vector.load %arg5[%c0_50, %c0_51] : memref<8x1xf32, #tpu.memory_space<vmem>>, vector<8x1xf32>
    %59 = vector.broadcast %58 : vector<8x1xf32> to vector<8x286xf32>
    %60 = arith.addf %57, %59 : vector<8x286xf32>
    %cst_52 = arith.constant 0.000000e+00 : f32
    %61 = vector.broadcast %cst_52 : f32 to vector<8x286xf32>
    %62 = arith.maximumf %60, %61 : vector<8x286xf32>
    %c0_53 = arith.constant 0 : index
    %c0_54 = arith.constant 0 : index
    %c0_55 = arith.constant 0 : index
    %63 = vector.load %arg6[%c0_53, %c0_54, %c0_55] : memref<1x8x286xf32, #tpu.memory_space<vmem>>, vector<1x8x286xf32>
    %64 = vector.shape_cast %63 : vector<1x8x286xf32> to vector<8x286xf32>
    %65 = vector.shape_cast %62 : vector<8x286xf32> to vector<1x8x286xf32>
    tpu.vector_store %arg6[%c0_53, %c0_54, %c0_55], %65 {strides = array<i32>} : memref<1x8x286xf32, #tpu.memory_space<vmem>>, vector<1x8x286xf32>,
    return
  }
  func.func @transform_0(%arg0: i32, %arg1: i32) -> (i32, i32, i32) {
    %c0_i32 = arith.constant 0 : i32
    %c0_i32_0 = arith.constant 0 : i32
    %c0_i32_1 = arith.constant 0 : i32
    return %arg0, %c0_i32, %c0_i32_0 : i32, i32, i32
  }
  func.func @transform_1(%arg0: i32, %arg1: i32) -> (i32, i32, i32) {
    %c0_i32 = arith.constant 0 : i32
    %c0_i32_0 = arith.constant 0 : i32
    %c0_i32_1 = arith.constant 0 : i32
    return %c0_i32, %arg1, %c0_i32_0 : i32, i32, i32
  }
  func.func @transform_2(%arg0: i32, %arg1: i32) -> (i32, i32) {
    %c0_i32 = arith.constant 0 : i32
    %c0_i32_0 = arith.constant 0 : i32
    return %arg1, %c0_i32 : i32, i32
  }
  func.func @transform_3(%arg0: i32, %arg1: i32) -> (i32, i32) {
    %c0_i32 = arith.constant 0 : i32
    %c0_i32_0 = arith.constant 0 : i32
    return %arg1, %c0_i32 : i32, i32
  }
  func.func @transform_4(%arg0: i32, %arg1: i32) -> (i32, i32, i32) {
    %c0_i32 = arith.constant 0 : i32
    %c0_i32_0 = arith.constant 0 : i32
    return %arg0, %arg1, %c0_i32 : i32, i32, i32
  }
}

</mosaic_0001>

<bundles_post_ra>
// kernel: tpu_custom_call.1
= control target key start
LH: loop header
LB: loop body
LE: loop exit
PB: predicated region body
PF: predicated region fallthrough
CT: control target
= control target key end

     0   :  { %9 = vsyncpa [#allocation3], 0  ;;  %s2546_s0 = inlined_call_operand.vmem [shape: f32[2,4,324], index: 0, kind: input, shape index: {}]   ;;  %s2547_s1 = inlined_call_operand.vmem [shape: f32[9,8,4], index: 1, kind: input, shape index: {}]   ;;  %s2548_s2 = inlined_call_operand.vmem [shape: f32[8,1], index: 2, kind: input, shape index: {}]   ;;  %s2549_s3 = inlined_call_operand.vmem [shape: f32[8,1], index: 3, kind: input, shape index: {}]   ;;  %s2550_s4 = inlined_call_operand.hbm [shape: f32[2,8,286], index: 4, kind: output, shape index: {}]  }
   0x1   :  { %11 = vsyncpa [#allocation3 + $0x1], 0  ;;  %s2269_s15 = smov 0   ;;  %s2271_s16 = smov 0  }
   0x2   :  { %s2273_s17 = smov 0   ;;  %s2275_s18 = smov 0  }
   0x3   :  { %s2277_s19 = smov 0   ;;  %s2279_s20 = smov 0  }
   0x4 LB: > { %s1920_s21 = sadd.s32 4294967295, %s2230_s20   ;;  %s1921_s22 = sadd.s32 4294967294, %s2230_s20   ;;  %s2230_s20 = sphi %s2279_s20, %s17_s20   ;;  %s2226_s19 = sphi %s2277_s19, %s2557_s19   ;;  %s2222_s18 = sphi %s2275_s18, %s2556_s18   ;;  %s2218_s17 = sphi %s2273_s17, %s2555_s17   ;;  %s2214_s16 = sphi %s2271_s16, %s2554_s16   ;;  %s2210_s15 = sphi %s2269_s15, %s2553_s15  }
   0x5   : > { %s29_s23 = sadd.s32 1, %s2226_s19  ;;  %s142_s24 = sadd.s32 1, %s2218_s17 }
   0x6   : > { %p31_p0 = scmp.ge.s32.totalorder %s29_s23, 2  ;;  %p152_p1 = scmp.ne.s32.totalorder %s2218_s17, %s2214_s16 }
   0x7   : > { %p153_p2 = scmp.eq.s32.totalorder %s1920_s21, 1  ;;  %p158_p3 = scmp.ne.s32.totalorder %s2214_s16, %s2210_s15 }
   0x8   : > { %s2559_s23 = smov (%p31_p0, %s29_s23), 0  ;;  %p159_p5 = scmp.eq.s32.totalorder %s1921_s22, 1 }
   0x9   : > { %p2309_p4 = por %p153_p2, %p152_p1  ;;  %s137_s26 = ssub.s32 %s2226_s19, %s2559_s23 }
   0xa   : > { %p1927_p6 = scmp.ge.s32.totalorder %s2230_s20, 1  ;;  %p140_p7 = scmp.eq.s32.totalorder %s137_s26, 0 }
   0xb   : > { %p2316_p8 = por %p159_p5, %p158_p3  ;;  %p206_p9 = scmp.lt.s32.totalorder %s2230_s20, 3 }
   0xc   : > { %s2322_s28 = scalar_select %p140_p7, %s2218_s17, %s142_s24  }
   0xd   : > { %p207_p10 = pnand %p1927_p6, %p206_p9 }
   0xe   : > { %p244_p11 = scmp.lt.s32.totalorder (!%p207_p10), %s2222_s18, 1  ;;  %v2232_v0 = vmov (!%p207_p10), 0.0   ;;  %vm2233_vm0 = vmmov (!%p207_p10), 0   ;;  %s2234_s8 = smov (!%p207_p10), 127   ;;  %v1763_v11 = vld [vmem:[%s2548_s2] sm:$0xff] (!%p207_p10)  ;;  %v2242_v13 = vmov (!%p207_p10), 0  }
   0xf   : > { %210 = sbr.rel (%p207_p10) target bundleno = 449 (0x1c1), region = 36  ;;  %2003 = vmatprep.subr.mxu1 (!%p207_p10), %v2232_v0  ;;  %2005 = vmatprep.mubr.msk.f32.mxu1 (!%p207_p10), %vm2233_vm0, %v2232_v0  ;;  %s2235_s9 = smov (!%p207_p10), 126   ;;  %v1772_v12 = vld [vmem:[%s2549_s3] sm:$0xff] (!%p207_p10)  ;;  %vm282_vm1 = vcmask (!%p207_p10), 1043456   ;;  %vm275_vm2 = vcmask (!%p207_p10), 1039360   ;;  %v1929_v17 = vld [vmem:[%s2547_s1 + $0x8] sm:$0xff] (!%p207_p10) }
  0x10   : > { %353 = vmatprep.mubr.f32.mxu0 (!%p207_p10), %v2232_v0  ;;  %s2236_s10 = smov (!%p207_p10), 110   ;;  %s2237_s11 = smov (!%p207_p10), 109   ;;  %2149 = vset.pattern.permute.xlu0 (!%p207_p10), %v2242_v13  ;;  %vm278_vm3 = vcmask (!%p207_p10), 31744   ;;  %vm593_vm4 = vcmask (!%p207_p10), 1031168   ;;  %v263_v24 = vld [vmem:[%s2547_s1] sm:$0xff] (!%p207_p10)  ;;  %vm762_vm5 = vcmask (!%p207_p10), 900096  }
  0x11   : > { %s2238_s12 = smov (!%p207_p10), 108   ;;  %s2239_s13 = smov (!%p207_p10), 92   ;;  %2150 = vset.pattern.permute.xlu1 (!%p207_p10), %v2242_v13  ;;  %v1940_v31 = vld [vmem:[%s2547_s1 + $0x10] sm:$0xff] (!%p207_p10)  ;;  %vm931_vm6 = vcmask (!%p207_p10), 891904   ;;  %v1946_v37 = vld [vmem:[%s2547_s1 + $0x18] sm:$0xff] (!%p207_p10)  ;;  %vm1100_vm7 = vcmask (!%p207_p10), 883712  }
  0x12   : > { %s2240_s14 = smov (!%p207_p10), 91   ;;  %s2241_s21 = smov (!%p207_p10), 90   ;;  %v1952_v43 = vld [vmem:[%s2547_s1 + $0x20] sm:$0xff] (!%p207_p10)  ;;  %vm1269_vm8 = vcmask (!%p207_p10), 752640   ;;  %v1958_v49 = vld [vmem:[%s2547_s1 + $0x28] sm:$0xff] (!%p207_p10)  ;;  %vm1438_vm9 = vcmask (!%p207_p10), 744448  }
  0x13   : > { %v1964_v54 = vld [vmem:[%s2547_s1 + $0x30] sm:$0xff] (!%p207_p10)  ;;  %vm1607_vm10 = vcmask (!%p207_p10), 736256   ;;  %v1970_v60 = vld [vmem:[%s2547_s1 + $0x38] sm:$0xff] (!%p207_p10)  ;;  %v1976_v62 = vld [vmem:[%s2547_s1 + $0x40] sm:$0xff] (!%p207_p10)  ;;  %s241_s6 = sand.u32 (!%p207_p10), 1, %s2214_s16   ;;  %vm1786_vm11 = vcmask (!%p207_p10), 244736  }
  0x16   : > { %s245_s29 = scalar_select %p244_p11, %s2222_s18, 1 }
  0x18   : > { %s2081_s30 = smul.u32 12, %s245_s29 }
  0x1a   : > { %s2333_s7 = scalar_lea.vmem %s2546_s0, %s2081_s30 }
  0x1b   : > { %v2336_v1 = vld [vmem:[%s2333_s7] sm:$0xff]  ;;  %v2345_v3 = vld [vmem:[%s2333_s7 + $0x8] sm:$0xf] }
  0x1c   : > { %269 = vrot.lane.b32.xlu1 %v2336_v1, %s2234_s8  ;;  %v2341_v2 = vcombine.high %v2336_v1, %v2336_v1  ;;  %v581_v4 = vld [vmem:[%s2333_s7 + $0x8] sm:$0xf] }
  0x1d   : > { %v750_v5 = vld [vmem:[%s2333_s7 + $0x8] sm:$0xf] }
  0x1e   : > { %271 = vrot.lane.b32.xlu0 %v2341_v2, %s2234_s8  ;;  %v919_v6 = vld [vmem:[%s2333_s7 + $0x8] sm:$0xf] }
  0x1f   : > { %v1088_v7 = vld [vmem:[%s2333_s7 + $0x8] sm:$0xf] }
  0x20   : > { %589 = vrot.lane.b32.xlu1 %v2341_v2, %s2235_s9  ;;  %v1257_v8 = vld [vmem:[%s2333_s7 + $0x8] sm:$0xf] }
  0x21   : > { %v1426_v9 = vld [vmem:[%s2333_s7 + $0x8] sm:$0xf] }
  0x22   : > { %273 = vrot.lane.b32.xlu0 %v2345_v3, %s2234_s8  ;;  %v1595_v10 = vld [vmem:[%s2333_s7 + $0x8] sm:$0xf]  ;;  %s2080_s7 = smul.u32 24, %s241_s6 }
  0x23   : > { %s2082_s8 = smul.u32 384, %s2222_s18  ;;  %s1789_s18 = scalar_lea.sflag [#allocation3], %s241_s6 }
  0x24   : > { %587 = vrot.lane.b32.xlu1 %v2336_v1, %s2235_s9 }
  0x26   : > { %591 = vrot.lane.b32.xlu0 %v581_v4, %s2235_s9  ;;  %s243_s9 = scalar_lea.vmem [#allocation2], %s2080_s7 }
  0x28   : > { %760 = vrot.lane.b32.xlu1 %v750_v5, %s2236_s10 }
  0x2a   : > { %758 = vrot.lane.b32.xlu0 %v2341_v2, %s2236_s10 }
  0x2c   : > { %927 = vrot.lane.b32.xlu1 %v2341_v2, %s2237_s11 }
  0x2e   : > { %756 = vrot.lane.b32.xlu0 %v2336_v1, %s2236_s10  ;;  %s1805_s10 = sshll.u32 %s243_s9, 4  ;;  %s2501_s10 = int_to_ptr.vmem [resolvable:$true] %s1805_s10 }
  0x30   : > { %925 = vrot.lane.b32.xlu1 %v2336_v1, %s2237_s11 }
  0x32   : > { %929 = vrot.lane.b32.xlu0 %v919_v6, %s2237_s11 }
  0x34   : > { %1098 = vrot.lane.b32.xlu1 %v1088_v7, %s2238_s12 }
  0x36   : > { %1096 = vrot.lane.b32.xlu0 %v2341_v2, %s2238_s12 }
  0x38   : > { %1265 = vrot.lane.b32.xlu1 %v2341_v2, %s2239_s13 }
  0x3a   : > { %1094 = vrot.lane.b32.xlu0 %v2336_v1, %s2238_s12 }
  0x3c   : > { %1263 = vrot.lane.b32.xlu1 %v2336_v1, %s2239_s13 }
  0x3e   : > { %1267 = vrot.lane.b32.xlu0 %v1257_v8, %s2239_s13  ;;  %s2499_s13 = scalar_lea.hbm %s2550_s4, %s2082_s8 }
  0x40   : > { %1436 = vrot.lane.b32.xlu1 %v1426_v9, %s2240_s14 }
  0x42   : > { %1434 = vrot.lane.b32.xlu0 %v2341_v2, %s2240_s14 }
  0x44   : > { %1603 = vrot.lane.b32.xlu1 %v2341_v2, %s2241_s21 }
  0x46   : > { %1432 = vrot.lane.b32.xlu0 %v2336_v1, %s2240_s14  ;;  %s2152_s14 = scalar_lea.vmem %s2501_s10, 384 }
  0x47   : > { %p2153_p12 = scmp.ne.s32.totalorder %s2501_s10, %s2152_s14 }
  0x48   : > { %1601 = vrot.lane.b32.xlu1 %v2336_v1, %s2241_s21 }
  0x49   : > { %p2154_p13 = pnand %p2153_p12, %p2309_p4 }
  0x4a   : > { %1605 = vrot.lane.b32.xlu0 %v1595_v10, %s2241_s21  ;;  %s2243_s21 = smov [#allocation2]  }
  0x4b   : > { %p2155_p0 = pneg %p2154_p13  ;;  %s2156_s22 = sshll.u32 %s2243_s21, 4  ;;  %s2157_s22 = int_to_ptr.vmem [resolvable:$false] %s2156_s22 }
  0x4c   : > { %1775 = vperm.xlu1 %2150, %v1772_v12   ;;  %s2158_s24 = scalar_lea.vmem %s2157_s22, 768  ;;  %p2159_p1 = scmp.lt.s32.totalorder %s2501_s10, %s2157_s22 }
  0x4d   : > { %p2160_p2 = scmp.lt.s32.totalorder %s2158_s24, %s2152_s14 }
  0x4e   : > { %1766 = vperm.xlu0 %2149, %v1763_v11  }
  0x4f   : > { %p2161_p3 = por %p2160_p2, %p2159_p1 }
  0x51   : > { %p2162_p5 = pnand %p2161_p3, %p2155_p0 }
  0x8e   : > { %v270_v14 = vpop.permute.xlu1 %269 }
  0x90   : > { %v272_v15 = vpop.permute.xlu0 %271 }
  0x91   : > { %v276_v20 = vsel %vm275_vm2, %v270_v14, %v272_v15 }
  0x92   : > { %v590_v16 = vpop.permute.xlu1 %589 }
  0x94   : > { %v274_v18 = vpop.permute.xlu0 %273 }
  0x95   : > { %2004 = vmatpush3.msk.msra.mxu1 %vm282_vm1, %v274_v18  ;;  %v277_v19 = vsel %vm275_vm2, %v272_v15, %v274_v18 }
  0x96   : > { %1930 = vmatprep.subr.msk.mxu0 %vm282_vm1, %v277_v19  ;;  %2006 = vmatmul.mubr.msk.f32.vlgmr.msra.gmra.mrb[0].mxu1 %vm278_vm3, %v1929_v17  ;;  %v588_v21 = vpop.permute.xlu1 %587 }
  0x97   : > { %1931 = vmatpush1.msk.msra.mxu0 %vm282_vm1, %v276_v20  ;;  %2008 = vmatprep.subr.mxu1 %v2232_v0  ;;  %v594_v27 = vsel %vm593_vm4, %v588_v21, %v590_v16 }
  0x98   : > { %1932 = vmatmul.mubr.msk.f32.vlgmr.msra.gmra.mrb[0].mxu0 %vm278_vm3, %v1929_v17  ;;  %1935 = vmatprep.subr.msk.mxu0 %vm282_vm1, %v2341_v2  ;;  %v592_v22 = vpop.permute.xlu0 %591 }
  0x99   : > { %1936 = vmatpush1.msk.msra.mxu0 %vm282_vm1, %v2336_v1  ;;  %2009 = vmatpush3.msk.msra.mxu1 %vm282_vm1, %v2345_v3  ;;  %v595_v23 = vsel %vm593_vm4, %v590_v16, %v592_v22 }
  0x9a   : > { %2010 = vmatprep.mubr.msk.f32.mxu1 %vm2233_vm0, %v2232_v0  ;;  %1941 = vmatprep.subr.msk.mxu0 %vm282_vm1, %v595_v23  ;;  %v761_v26 = vpop.permute.xlu1 %760 }
  0x9b   : > { %2013 = vmatprep.subr.mxu1 %v2232_v0  ;;  %503 = vmatprep.mubr.f32.mxu0 %v2232_v0 }
  0x9c   : > { %v759_v25 = vpop.permute.xlu0 %758 }
  0x9d   : > { %v764_v28 = vsel %vm762_vm5, %v759_v25, %v761_v26 }
  0x9e   : > { %2011 = vmatmul.mubr.msk.f32.vlgmr.msra.gmra.mrb[0].mxu1 %vm278_vm3, %v263_v24  ;;  %v928_v30 = vpop.permute.xlu1 %927 }
  0x9f   : > { %2014 = vmatpush3.msk.msra.mxu1 %vm282_vm1, %v592_v22  ;;  %2015 = vmatprep.mubr.msk.f32.mxu1 %vm2233_vm0, %v2232_v0 }
  0xa0   : > { %1937 = vmatmul.mubr.msk.f32.vlgmr.msra.gmra.mrb[0].mxu0 %vm278_vm3, %v263_v24  ;;  %v757_v29 = vpop.permute.xlu0 %756  ;;  %2018 = vmatprep.subr.mxu1 %v2232_v0 }
  0xa1   : > { %1942 = vmatpush1.msk.msra.mxu0 %vm282_vm1, %v594_v27  ;;  %669 = vmatprep.mubr.f32.mxu0 %v2232_v0  ;;  %v763_v33 = vsel %vm762_vm5, %v757_v29, %v759_v25 }
  0xa2   : > { %1947 = vmatprep.subr.msk.mxu0 %vm282_vm1, %v764_v28  ;;  %v926_v35 = vpop.permute.xlu1 %925 }
  0xa3   : > { %v932_v39 = vsel %vm931_vm6, %v926_v35, %v928_v30 }
  0xa4   : > { %v930_v32 = vpop.permute.xlu0 %929 }
  0xa5   : > { %v933_v34 = vsel %vm931_vm6, %v928_v30, %v930_v32 }
  0xa6   : > { %2016 = vmatmul.mubr.msk.f32.vlgmr.msra.gmra.mrb[0].mxu1 %vm278_vm3, %v1940_v31  ;;  %v1099_v38 = vpop.permute.xlu1 %1098 }
  0xa7   : > { %2019 = vmatpush3.msk.msra.mxu1 %vm282_vm1, %v761_v26  ;;  %2020 = vmatprep.mubr.msk.f32.mxu1 %vm2233_vm0, %v2232_v0 }
  0xa8   : > { %1943 = vmatmul.mubr.msk.f32.vlgmr.msra.gmra.mrb[0].mxu0 %vm278_vm3, %v1940_v31  ;;  %2023 = vmatprep.subr.mxu1 %v2232_v0  ;;  %v1097_v36 = vpop.permute.xlu0 %1096 }
  0xa9   : > { %1948 = vmatpush1.msk.msra.mxu0 %vm282_vm1, %v763_v33  ;;  %838 = vmatprep.mubr.f32.mxu0 %v2232_v0  ;;  %v1102_v40 = vsel %vm1100_vm7, %v1097_v36, %v1099_v38 }
  0xaa   : > { %1953 = vmatprep.subr.msk.mxu0 %vm282_vm1, %v933_v34  ;;  %v1266_v42 = vpop.permute.xlu1 %1265 }
  0xac   : > { %v1095_v41 = vpop.permute.xlu0 %1094 }
  0xad   : > { %v1101_v45 = vsel %vm1100_vm7, %v1095_v41, %v1097_v36 }
  0xae   : > { %2021 = vmatmul.mubr.msk.f32.vlgmr.msra.gmra.mrb[0].mxu1 %vm278_vm3, %v1946_v37  ;;  %v1264_v47 = vpop.permute.xlu1 %1263 }
  0xaf   : > { %2024 = vmatpush3.msk.msra.mxu1 %vm282_vm1, %v930_v32  ;;  %2025 = vmatprep.mubr.msk.f32.mxu1 %vm2233_vm0, %v2232_v0  ;;  %v1270_v51 = vsel %vm1269_vm8, %v1264_v47, %v1266_v42 }
  0xb0   : > { %1949 = vmatmul.mubr.msk.f32.vlgmr.msra.gmra.mrb[0].mxu0 %vm278_vm3, %v1946_v37  ;;  %2028 = vmatprep.subr.mxu1 %v2232_v0  ;;  %v1268_v44 = vpop.permute.xlu0 %1267 }
  0xb1   : > { %1954 = vmatpush1.msk.msra.mxu0 %vm282_vm1, %v932_v39  ;;  %1007 = vmatprep.mubr.f32.mxu0 %v2232_v0  ;;  %v1271_v46 = vsel %vm1269_vm8, %v1266_v42, %v1268_v44 }
  0xb2   : > { %1959 = vmatprep.subr.msk.mxu0 %vm282_vm1, %v1102_v40  ;;  %v1437_v50 = vpop.permute.xlu1 %1436 }
  0xb4   : > { %v1435_v48 = vpop.permute.xlu0 %1434 }
  0xb5   : > { %v1440_v52 = vsel %vm1438_vm9, %v1435_v48, %v1437_v50 }
  0xb6   : > { %2026 = vmatmul.mubr.msk.f32.vlgmr.msra.gmra.mrb[0].mxu1 %vm278_vm3, %v1952_v43  ;;  %v1604_v56 = vpop.permute.xlu1 %1603 }
  0xb7   : > { %2029 = vmatpush3.msk.msra.mxu1 %vm282_vm1, %v1099_v38  ;;  %2030 = vmatprep.mubr.msk.f32.mxu1 %vm2233_vm0, %v2232_v0 }
  0xb8   : > { %1955 = vmatmul.mubr.msk.f32.vlgmr.msra.gmra.mrb[0].mxu0 %vm278_vm3, %v1952_v43  ;;  %2033 = vmatprep.subr.mxu1 %v2232_v0  ;;  %v1433_v53 = vpop.permute.xlu0 %1432 }
  0xb9   : > { %1960 = vmatpush1.msk.msra.mxu0 %vm282_vm1, %v1101_v45  ;;  %1176 = vmatprep.mubr.f32.mxu0 %v2232_v0  ;;  %v1439_v57 = vsel %vm1438_vm9, %v1433_v53, %v1435_v48 }
  0xba   : > { %1965 = vmatprep.subr.msk.mxu0 %vm282_vm1, %v1271_v46  ;;  %v1602_v59 = vpop.permute.xlu1 %1601 }
  0xbb   : > { %v1608_v61 = vsel %vm1607_vm10, %v1602_v59, %v1604_v56 }
  0xbc   : > { %v1606_v55 = vpop.permute.xlu0 %1605 }
  0xbd   : > { %v1609_v58 = vsel %vm1607_vm10, %v1604_v56, %v1606_v55 }
  0xbe   : > { %2031 = vmatmul.mubr.msk.f32.vlgmr.msra.gmra.mrb[0].mxu1 %vm278_vm3, %v1958_v49 }
  0xbf   : > { %2034 = vmatpush3.msk.msra.mxu1 %vm282_vm1, %v1268_v44  ;;  %2035 = vmatprep.mubr.msk.f32.mxu1 %vm2233_vm0, %v2232_v0 }
  0xc0   : > { %1961 = vmatmul.mubr.msk.f32.vlgmr.msra.gmra.mrb[0].mxu0 %vm278_vm3, %v1958_v49  ;;  %2038 = vmatprep.subr.mxu1 %v2232_v0 }
  0xc1   : > { %1966 = vmatpush1.msk.msra.mxu0 %vm282_vm1, %v1270_v51  ;;  %1345 = vmatprep.mubr.f32.mxu0 %v2232_v0 }
  0xc2   : > { %1971 = vmatprep.subr.msk.mxu0 %vm282_vm1, %v1440_v52 }
  0xc6   : > { %2036 = vmatmul.mubr.msk.f32.vlgmr.msra.gmra.mrb[0].mxu1 %vm278_vm3, %v1964_v54 }
  0xc7   : > { %2039 = vmatpush3.msk.msra.mxu1 %vm282_vm1, %v1437_v50  ;;  %2040 = vmatprep.mubr.msk.f32.mxu1 %vm2233_vm0, %v2232_v0 }
  0xc8   : > { %1967 = vmatmul.mubr.msk.f32.vlgmr.msra.gmra.mrb[0].mxu0 %vm278_vm3, %v1964_v54  ;;  %2043 = vmatprep.subr.mxu1 %v2232_v0 }
  0xc9   : > { %1972 = vmatpush1.msk.msra.mxu0 %vm282_vm1, %v1439_v57  ;;  %1514 = vmatprep.mubr.f32.mxu0 %v2232_v0 }
  0xca   : > { %1977 = vmatprep.subr.msk.mxu0 %vm282_vm1, %v1609_v58 }
  0xcb   : > { %v1776_v2 = vpop.permute.xlu1 %1775 }
  0xcd   : > { %v1767_v63 = vpop.permute.xlu0 %1766 }
  0xce   : > { %2041 = vmatmul.mubr.msk.f32.vlgmr.msra.gmra.mrb[0].mxu1 %vm278_vm3, %v1970_v60 }
  0xcf   : > { %2044 = vmatpush3.msk.msra.mxu1 %vm282_vm1, %v1606_v55  ;;  %2045 = vmatprep.mubr.msk.f32.mxu1 %vm2233_vm0, %v2232_v0 }
  0xd0   : > { %1973 = vmatmul.mubr.msk.f32.vlgmr.msra.gmra.mrb[0].mxu0 %vm278_vm3, %v1970_v60 }
  0xd1   : > { %1978 = vmatpush1.msk.msra.mxu0 %vm282_vm1, %v1608_v61  ;;  %1683 = vmatprep.mubr.f32.mxu0 %v2232_v0 }
  0xd6   : > { %2046 = vmatmul.mubr.msk.f32.vlgmr.msra.gmra.mrb[0].mxu1 %vm278_vm3, %v1976_v62 }
  0xd8   : > { %1979 = vmatmul.mubr.msk.f32.vlgmr.msra.gmra.mrb[0].mxu0 %vm278_vm3, %v1976_v62 }
 0x1a9   : > { %v1756_v1 = vpop.f32.mrb[0].mxu1 }
 0x1aa   : > { %v1771_v3 = vmul.f32 %v1767_v63, %v1756_v1  ;;  %v2047_v4 = vpop.f32.mrb[1].mxu1 }
 0x1ab   : > { %v1685_v5 = vpop.f32.mrb[0].mxu0 }
 0x1ac   : > { %v1780_v6 = vadd.f32 %v1776_v2, %v1771_v3  ;;  %v1769_v7 = vmul.f32 %v1767_v63, %v1685_v5  ;;  %v1687_v0 = vpop.f32.mrb[1].mxu0 }
 0x1ad   : > { %v1770_v8 = vmul.f32 %v1767_v63, %v1687_v0 }
 0x1ae   : > { %v1783_v9 = vmax.f32 %v1780_v6, 0.0  ;;  %v1778_v10 = vadd.f32 %v1776_v2, %v1769_v7 }
 0x1af   : > { %v1779_v11 = vadd.f32 %v1776_v2, %v1770_v8 }
 0x1b0   : > { %1787 = vst.msk [vmem:[%s243_s9 + $0x10] sm:$0xff] %vm1786_vm11, %v1783_v9  ;;  %v1781_v12 = vmax.f32 %v1778_v10, 0.0 }
 0x1b1   : > { %v1782_v13 = vmax.f32 %v1779_v11, 0.0 }
 0x1b2   : > { %1784 = vst [vmem:[%s243_s9] sm:$0xff] %v1781_v12 }
 0x1b3   : > { %1785 = vst [vmem:[%s243_s9 + $0x8] sm:$0xff] %v1782_v13 }
 0x1b4   : > { %2165 = shalt.err (!%p2162_p5)
}
 0x1b5   : > { %s2166_s26 = scalar_lea.hbm %s2499_s13, 384  ;;  %s2170_s5 = scalar_lea.hbm %s2550_s4, 768 }
 0x1b6   : > { %p2167_p6 = scmp.ne.s32.totalorder %s2499_s13, %s2166_s26  ;;  %p2171_p10 = scmp.lt.u32.totalorder %s2499_s13, %s2550_s4 }
 0x1b7   : > { %p2172_p11 = scmp.lt.u32.totalorder %s2170_s5, %s2166_s26  ;;  %p2174_p13 = scmp.lt.u32.totalorder %s2166_s26, %s2499_s13 }
 0x1b8   : > { %p2168_p7 = pnand %p2167_p6, %p2309_p4 }
 0x1b9   : > { %p2173_p12 = por %p2172_p11, %p2171_p10 }
 0x1ba   : > { %p2169_p9 = pneg %p2168_p7 }
 0x1bb   : > { %p2175_p0 = por %p2174_p13, %p2173_p12 }
 0x1bd   : > { %p2176_p1 = pnand %p2175_p0, %p2169_p9 }
 0x1bf   : > { %2179 = shalt.err (!%p2176_p1)
}
 0x1c0   : > { %2083 = dma.vmem_to_hbm [thread:$0]  (%p2309_p4), %s2501_s10, 384, %s2499_s13, %s1789_s18  }
 0x1c1 PF: > { %p2089_p2 = scmp.ge.s32.totalorder %s2230_s20, 2  ;;  %s1817_s8 = sand.u32 1, %s2210_s15  }
 0x1c2   : > { %s1818_s9 = scalar_lea.sflag [#allocation3], %s1817_s8 }
 0x1c3   : > { %p2086_p3 = pnand %p2089_p2, %p2316_p8 }
 0x1c5   : > { %2205 = dma.done.wait (!%p2086_p3), %s1818_s9, 384  }
 0x1c6   : > { %2207 = vsyncadd (!%p2086_p3), %s1818_s9, 4294966912  ;;  %s17_s20 = sadd.s32 1, %s2230_s20   ;;  %s2553_s15 = smov %s2214_s16 }
 0x1c7   : > { %p14_p5 = scmp.ge.s32.totalorder %s17_s20, 4   ;;  %s2554_s16 = smov %s2218_s17 }
 0x1c8   : > { %s2555_s17 = smov %s2322_s28  ;;  %s2556_s18 = smov %s2226_s19 }
 0x1c9   : > { %s2557_s19 = smov %s2559_s23  ;;  %16 = sbr.rel (!%p14_p5) target bundleno = 4 (0x4), region = 88 }
 0x1d0   :  { %1823 = vsyncpa [#allocation3], 1 }
 0x1d1   :  { %1825 = vsyncpa [#allocation3 + $0x1], 1 }

</bundles_post_ra>
